<compile_context>
chip_gen: v7x
topology: tpu7x:2x2x1
jax: 0.10.0
libtpu: 0.0.40
codegen_flags: <defaults>
</compile_context>

<pallas_src>
import jax
import jax.numpy as jnp
from jax.experimental import pallas as pl
from jax.experimental.pallas import tpu as pltpu

LANES = 128  # f32 vreg lane width


def _ceil_div(a, b):
    return -(-a // b)


def affine_kernel(x_ref, wb_ref, o_ref):
    # y = w * x + b — one VALU mul+add per vreg; w, b are SMEM scalars.
    w = wb_ref[0]
    b = wb_ref[1]
    o_ref[...] = x_ref[...] * w + b


def _affine_bulk(x2d, wb, tr, grid_steps):
    """Run the affine kernel over a lane-dense (rows, 128) f32 slab."""
    rows = x2d.shape[0]
    return pl.pallas_call(
        affine_kernel,
        out_shape=jax.ShapeDtypeStruct((rows, LANES), jnp.float32),
        grid_spec=pltpu.PrefetchScalarGridSpec(
            num_scalar_prefetch=0,
            grid=(grid_steps,),
            in_specs=[
                # (tr, 128) f32 tile; tr<=4096 keeps in+out double-buffering
                # at <= 8 MiB, under the 16 MiB v5e default scoped VMEM.
                pl.BlockSpec((tr, LANES), lambda i: (i, 0)),
                # Scalar params as a single (2,) SMEM vector — no padded
                # (8,128) VMEM tiles, no per-step vector DMA for two floats.
                pl.BlockSpec(memory_space=pltpu.MemorySpace.SMEM),
            ],
            out_specs=pl.BlockSpec((tr, LANES), lambda i: (i, 0)),
        ),
        compiler_params=pltpu.CompilerParams(
            # Rows are independent — megacore-shardable on v7x.
            dimension_semantics=("parallel",),
        ),
        # Output has identical shape/dtype to the input slab; let XLA reuse
        # the buffer (footprint win, bandwidth unchanged).
        input_output_aliases={0: 0},
    )(x2d, wb)


def _pick_tile(rows, block_rows):
    """Static (Python-int) row-tile selection obeying the (8,128) rule."""
    if rows < 16:
        # Tiny: one block equal to the full row extent (always legal).
        return rows, 1
    # Multiple of 8 sublanes; cap at 4096 rows (2 MiB/buffer) for v5e VMEM.
    tr = max(8, (min(block_rows, 4096) // 8) * 8)
    if tr >= rows:
        # Prefer >=2 grid steps so both v7x TensorCores get work.
        tr = _ceil_div(_ceil_div(rows, 2), 8) * 8
    return tr, pl.cdiv(rows, tr)


def linear_forward(x, weight, bias, *, block_rows=2048):
    """x: (N, 1) f32, weight: (1, 1) f32, bias: (1,) f32 -> (N, 1) f32."""
    n = x.shape[0]
    x = x.astype(jnp.float32)
    w = weight.reshape(()).astype(jnp.float32)
    b = bias.reshape(()).astype(jnp.float32)
    wb = jnp.stack([w, b])  # (2,) SMEM scalars

    bulk_n = (n // LANES) * LANES
    rows = bulk_n // LANES

    if rows == 0:
        # Entire input is a sub-vreg tail: plain jnp affine, no kernel launch.
        return (x * w + b).reshape(n, 1)

    tr, grid_steps = _pick_tile(rows, block_rows)

    if bulk_n == n:
        # Fast path: layout-preserving reshape only — no pad, no output slice.
        x2d = x.reshape(rows, LANES)
        out2d = _affine_bulk(x2d, wb, tr, grid_steps)
        return out2d.reshape(n, 1)

    # Ragged N: run the 128-aligned bulk through the kernel, do the <128
    # element tail in plain jnp, and stitch the two back together.
    x_flat = x.reshape(-1)
    x2d = x_flat[:bulk_n].reshape(rows, LANES)
    out_bulk = _affine_bulk(x2d, wb, tr, grid_steps).reshape(bulk_n, 1)
    tail = (x_flat[bulk_n:] * w + b).reshape(-1, 1)
    return jnp.concatenate([out_bulk, tail], axis=0)


if __name__ == "__main__":
    key = jax.random.PRNGKey(0)
    kx, kw, kb = jax.random.split(key, 3)

    # nn.Linear(1, 1): weight (1, 1), bias (1,)
    weight = jax.random.normal(kw, (1, 1), dtype=jnp.float32)
    bias = jax.random.normal(kb, (1,), dtype=jnp.float32)

    fwd = jax.jit(linear_forward, static_argnames=("block_rows",))

    # 1) Small, 128-aligned fast path (single full-extent block).
    n1 = 256
    x1 = jax.random.normal(kx, (n1, 1), dtype=jnp.float32)
    y1 = jax.block_until_ready(fwd(x1, weight, bias))
    assert y1.shape == (n1, 1)
    assert jnp.allclose(y1, x1 @ weight.T + bias, atol=1e-6), "mismatch (aligned small)"

    # 2) 128-aligned, multi-step pipelined grid (>=2 steps -> v7x both TCs).
    n2 = 8192
    x2 = jax.random.normal(kx, (n2, 1), dtype=jnp.float32)
    y2 = jax.block_until_ready(fwd(x2, weight, bias))
    assert jnp.allclose(y2, x2 @ weight.T + bias, atol=1e-6), "mismatch (aligned tiled)"

    # 3) Ragged N: 128-aligned bulk via kernel + <128-element tail in jnp.
    n3 = 1000
    x3 = jax.random.normal(kx, (n3, 1), dtype=jnp.float32)
    y3 = jax.block_until_ready(fwd(x3, weight, bias))
    assert y3.shape == (n3, 1)
    assert jnp.allclose(y3, x3 @ weight.T + bias, atol=1e-6), "mismatch (ragged)"

    # 4) Sub-128 N: pure jnp path (no kernel launch).
    n4 = 8
    x4 = jax.random.normal(kx, (n4, 1), dtype=jnp.float32)
    y4 = jax.block_until_ready(fwd(x4, weight, bias))
    assert jnp.allclose(y4, x4 @ weight.T + bias, atol=1e-6), "mismatch (tiny)"

    print("KERNEL_OK")
</pallas_src>

<mosaic_0001>
module attributes {stable_mosaic.version = 11 : i64} {
  func.func @affine_kernel(%arg0: i32, %arg1: memref<2x128xf32, #tpu.memory_space<vmem>>, %arg2: memref<2xf32, #tpu.memory_space<smem>>, %arg3: memref<2x128xf32, #tpu.memory_space<vmem>>) attributes {dimension_semantics = [#tpu.dimension_semantics<parallel>], iteration_bounds = array<i64: 1>, scalar_prefetch = 0 : i64, scratch_operands = 0 : i64, tpu.core_type = #tpu.core_type<tc>, window_params = [{transform_indices = @transform_0, window_bounds = array<i64: 2, 128>}, {transform_indices = @transform_1, window_bounds = array<i64: 2>}, {transform_indices = @transform_2, window_bounds = array<i64: 2, 128>}]} {
    %c0 = arith.constant 0 : index
    %0 = memref.load %arg2[%c0] : memref<2xf32, #tpu.memory_space<smem>>
    %c1 = arith.constant 1 : index
    %1 = memref.load %arg2[%c1] : memref<2xf32, #tpu.memory_space<smem>>
    %c0_0 = arith.constant 0 : index
    %c0_1 = arith.constant 0 : index
    %2 = vector.load %arg1[%c0_0, %c0_1] : memref<2x128xf32, #tpu.memory_space<vmem>>, vector<2x128xf32>
    %3 = vector.broadcast %0 : f32 to vector<2x128xf32>
    %4 = arith.mulf %2, %3 : vector<2x128xf32>
    %5 = vector.broadcast %1 : f32 to vector<2x128xf32>
    %6 = arith.addf %4, %5 : vector<2x128xf32>
    %c0_2 = arith.constant 0 : index
    %c0_3 = arith.constant 0 : index
    %7 = vector.load %arg3[%c0_2, %c0_3] : memref<2x128xf32, #tpu.memory_space<vmem>>, vector<2x128xf32>
    tpu.vector_store %arg3[%c0_2, %c0_3], %6 {strides = array<i32>} : memref<2x128xf32, #tpu.memory_space<vmem>>, vector<2x128xf32>,
    return
  }
  func.func @transform_0(%arg0: i32) -> (i32, i32) {
    %c0_i32 = arith.constant 0 : i32
    %c0_i32_0 = arith.constant 0 : i32
    return %arg0, %c0_i32 : i32, i32
  }
  func.func @transform_1(%arg0: i32) -> i32 {
    %c0_i32 = arith.constant 0 : i32
    %c0_i32_0 = arith.constant 0 : i32
    return %c0_i32 : i32
  }
  func.func @transform_2(%arg0: i32) -> (i32, i32) {
    %c0_i32 = arith.constant 0 : i32
    %c0_i32_0 = arith.constant 0 : i32
    return %arg0, %c0_i32 : i32, i32
  }
}

</mosaic_0001>

<bundles_post_ra>
// kernel: linear_forward.1
= control target key start
LH: loop header
LB: loop body
LE: loop exit
PB: predicated region body
PF: predicated region fallthrough
CT: control target
= control target key end

     0   :  { %7 = vsyncpa [#allocation3], 0  ;;  %s78_s0 = inlined_call_operand.vmem [shape: f32[2,128], index: 0, kind: input, shape index: {}, may-alias: {0,2}]   ;;  %s79_s1 = inlined_call_operand.vmem [shape: f32[2], index: 1, kind: input, shape index: {}]   ;;  %s80_s2 = inlined_call_operand.vmem [shape: f32[2,128], index: 2, kind: output, shape index: {}, may-alias: {0,2}]  }
   0x1   :  { %s16_s11 = sshll.u32 %s79_s1, 4  ;;  %s17_s11 = int_to_ptr.vmem [resolvable:$true] %s16_s11 }
   0x2   :  { %s39_s12 = scalar_lea.vmem %s17_s11, 16  ;;  %p44_p1 = scmp.lt.s32.totalorder %s17_s11, %s17_s11 }
   0x3   :  { %p40_p0 = scmp.ne.s32.totalorder %s17_s11, %s39_s12  ;;  %p45_p2 = scmp.lt.s32.totalorder %s39_s12, %s39_s12 }
   0x5   :  { %p46_p3 = por %p45_p2, %p44_p1 }
   0x7   :  { %p47_p4 = pnand %p46_p3, %p40_p0 }
   0x9   :  { %50 = shalt.err (!%p47_p4)
}
   0xa   :  { %s53_s13 = smov [#allocation2]  }
   0xb   :  { %19 = dma.vmem_to_smem %s17_s11, 16, %s53_s13, [#allocation3]  }
   0xc   :  { %51 = dma.done.wait [#allocation3], 16  }
   0xd   :  { %52 = vsyncadd [#allocation3], 4294967280 }
   0xe   :  { %23 = sfence }
   0xf   :  { %s24_s14 = sld [smem:[#allocation2]]  ;;  %s37_s15 = sld [smem:[#allocation2 + $0x1]]  ;;  %v26_v0 = vld [vmem:[%s78_s0] sm:$0x3] }
  0x15   :  { %v27_v1 = vstv %s24_s14  ;;  %v29_v2 = vstv %s37_s15 }
  0x16   :  { %v28_v3 = vmul.f32 %v27_v1, %v26_v0 }
  0x18   :  { %v30_v4 = vadd.f32 %v29_v2, %v28_v3 }
  0x1a   :  { %31 = vst [vmem:[%s80_s2] sm:$0x3] %v30_v4 }
  0x1b   :  { %36 = vsyncpa [#allocation3], 1 }

</bundles_post_ra>
